<compile_context>
chip_gen: v5e
topology: v5e:2x2
jax: 0.10.0
libtpu: 0.0.40
codegen_flags: <defaults>
</compile_context>

<pallas_src>
import jax
import jax.numpy as jnp
from jax.experimental import pallas as pl
from jax.experimental.pallas import tpu as pltpu

_LANES = 128


def _fused_1x1_conv_kernel(w_ref, x_ref, o_ref):
    # w_ref: SMEM (C, C) folded weight (out_ch, in_ch), read as scalars.
    # x_ref: VMEM (C, rows, 128) dense per-channel pixel planes.
    # o_ref: VMEM (C, rows, 128)
    c = o_ref.shape[0]
    # Load each input-channel plane exactly once (C planes, full vregs).
    planes = [x_ref[ci] for ci in range(c)]
    # Static unroll over (small) output/input channels: scalar * plane FMAs.
    for co in range(c):
        acc = planes[0] * w_ref[co, 0]
        for ci in range(1, c):
            acc = acc + planes[ci] * w_ref[co, ci]
        o_ref[co] = acc
    # TODO(synk): for large channel counts, switch to an MXU jnp.dot path with
    # 128-padded channel tiles instead of the scalar-FMA unroll.


def _pick_rows_tile(rows, c, budget_bytes=2 * 1024 * 1024):
    """Row tile (multiple of 8, or the full dim) so one (C, rows, 128) f32
    block stays <= ~2 MiB. Double-buffered input + output blocks then peak at
    ~8 MiB, safe under v5e's 16 MiB scoped-VMEM default (v6e/v7x: 32 MiB)."""
    rows_budget = max(8, (budget_bytes // (c * _LANES * 4)) // 8 * 8)
    if rows <= rows_budget:
        return rows  # full dim: exempt from the (8, 128) divisibility rule
    return rows_budget


@jax.jit
def basic_model_forward(x_nchw, w1, w2):
    """x_nchw: (N, C, H, W) f32; w1, w2: (C, C) f32 (squeezed 1x1 conv weights)."""
    N, C, H, W = x_nchw.shape
    HW = H * W

    # Fold conv2(conv1(.)) into a single channel-mixing matrix (one tiny XLA dot).
    w_fused = jnp.dot(w2, w1, preferred_element_type=jnp.float32)  # (C_out, C_in)

    hw_p = pl.cdiv(HW, _LANES) * _LANES
    x = x_nchw.reshape(N, C, HW)
    if hw_p != HW:
        # TODO(synk): replace this pad with in-kernel tail masking for spatial
        # sizes that are not a multiple of 128 (it is a no-op for this model).
        x = jnp.pad(x, ((0, 0), (0, 0), (0, hw_p - HW)))
    rows = hw_p // _LANES
    # Dense per-channel (sublane, lane) slabs; NCHW is already channel-major,
    # so this reshape is layout-free (no transpose, no extra HBM traffic).
    x = x.reshape(N, C, rows, _LANES)

    rows_tile = _pick_rows_tile(rows, C)
    num_row_tiles = pl.cdiv(rows, rows_tile)

    out = pl.pallas_call(
        _fused_1x1_conv_kernel,
        out_shape=jax.ShapeDtypeStruct((N, C, rows, _LANES), jnp.float32),
        grid=(N, num_row_tiles),
        in_specs=[
            # Folded weight: whole array in SMEM, scalar reads inside the kernel.
            pl.BlockSpec(memory_space=pltpu.MemorySpace.SMEM),
            # Per-sample pixel-plane blocks: full vreg tiles (rows_tile, 128).
            pl.BlockSpec((None, C, rows_tile, _LANES),
                         lambda n, t: (n, 0, t, 0)),
        ],
        out_specs=pl.BlockSpec((None, C, rows_tile, _LANES),
                               lambda n, t: (n, 0, t, 0)),
        compiler_params=pltpu.CompilerParams(
            dimension_semantics=("parallel", "parallel")),
        cost_estimate=pl.CostEstimate(
            flops=2 * C * C * N * hw_p,
            bytes_accessed=2 * N * C * hw_p * 4 + C * C * 4,
            transcendentals=0),
    )(w_fused, x)

    out = out.reshape(N, C, hw_p)
    if hw_p != HW:
        out = out[:, :, :HW]
    return out.reshape(N, C, H, W)


if __name__ == "__main__":
    key = jax.random.PRNGKey(0)
    k_x, k_w1, k_w2 = jax.random.split(key, 3)

    # Module defaults: num_channels=3, kernel_size=1. Small spatial shape.
    N, C, H, W = 2, 3, 16, 16
    x = jax.random.normal(k_x, (N, C, H, W), dtype=jnp.float32)
    # Conv2d(C, C, 1, bias=False).weight is (C_out, C_in, 1, 1); keep it squeezed.
    w1 = jax.random.normal(k_w1, (C, C), dtype=jnp.float32) * 0.5
    w2 = jax.random.normal(k_w2, (C, C), dtype=jnp.float32) * 0.5

    y = basic_model_forward(x, w1, w2)
    y = jax.block_until_ready(y)

    # Reference: the two sequential 1x1 convs as channel matmuls (un-folded).
    ref = jnp.einsum("oc,nchw->nohw", w2, jnp.einsum("oc,nchw->nohw", w1, x))
    assert y.shape == (N, C, H, W)
    assert jnp.allclose(y, ref, atol=1e-5, rtol=1e-5), "mismatch vs reference"

    print("KERNEL_OK")
</pallas_src>

<mosaic_0001>
module attributes {stable_mosaic.version = 11 : i64} {
  func.func @_fused_1x1_conv_kernel(%arg0: i32, %arg1: i32, %arg2: memref<3x3xf32, #tpu.memory_space<smem>>, %arg3: memref<1x3x2x128xf32, #tpu.memory_space<vmem>>, %arg4: memref<1x3x2x128xf32, #tpu.memory_space<vmem>>) attributes {dimension_semantics = [#tpu.dimension_semantics<parallel>, #tpu.dimension_semantics<parallel>], iteration_bounds = array<i64: 2, 1>, scalar_prefetch = 0 : i64, scratch_operands = 0 : i64, tpu.core_type = #tpu.core_type<tc>, window_params = [{transform_indices = @transform_0, window_bounds = array<i64: 3, 3>}, {transform_indices = @transform_1, window_bounds = array<i64: 1, 3, 2, 128>}, {transform_indices = @transform_2, window_bounds = array<i64: 1, 3, 2, 128>}]} {
    %c0 = arith.constant 0 : index
    %c0_0 = arith.constant 0 : index
    %c0_1 = arith.constant 0 : index
    %c0_2 = arith.constant 0 : index
    %0 = vector.load %arg3[%c0, %c0_0, %c0_1, %c0_2] : memref<1x3x2x128xf32, #tpu.memory_space<vmem>>, vector<1x1x2x128xf32>
    %1 = vector.shape_cast %0 : vector<1x1x2x128xf32> to vector<2x128xf32>
    %c0_3 = arith.constant 0 : index
    %c1 = arith.constant 1 : index
    %c0_4 = arith.constant 0 : index
    %c0_5 = arith.constant 0 : index
    %2 = vector.load %arg3[%c0_3, %c1, %c0_4, %c0_5] : memref<1x3x2x128xf32, #tpu.memory_space<vmem>>, vector<1x1x2x128xf32>
    %3 = vector.shape_cast %2 : vector<1x1x2x128xf32> to vector<2x128xf32>
    %c0_6 = arith.constant 0 : index
    %c2 = arith.constant 2 : index
    %c0_7 = arith.constant 0 : index
    %c0_8 = arith.constant 0 : index
    %4 = vector.load %arg3[%c0_6, %c2, %c0_7, %c0_8] : memref<1x3x2x128xf32, #tpu.memory_space<vmem>>, vector<1x1x2x128xf32>
    %5 = vector.shape_cast %4 : vector<1x1x2x128xf32> to vector<2x128xf32>
    %c0_9 = arith.constant 0 : index
    %c0_10 = arith.constant 0 : index
    %6 = memref.load %arg2[%c0_9, %c0_10] : memref<3x3xf32, #tpu.memory_space<smem>>
    %7 = vector.broadcast %6 : f32 to vector<2x128xf32>
    %8 = arith.mulf %1, %7 : vector<2x128xf32>
    %c0_11 = arith.constant 0 : index
    %c1_12 = arith.constant 1 : index
    %9 = memref.load %arg2[%c0_11, %c1_12] : memref<3x3xf32, #tpu.memory_space<smem>>
    %10 = vector.broadcast %9 : f32 to vector<2x128xf32>
    %11 = arith.mulf %3, %10 : vector<2x128xf32>
    %12 = arith.addf %8, %11 : vector<2x128xf32>
    %c0_13 = arith.constant 0 : index
    %c2_14 = arith.constant 2 : index
    %13 = memref.load %arg2[%c0_13, %c2_14] : memref<3x3xf32, #tpu.memory_space<smem>>
    %14 = vector.broadcast %13 : f32 to vector<2x128xf32>
    %15 = arith.mulf %5, %14 : vector<2x128xf32>
    %16 = arith.addf %12, %15 : vector<2x128xf32>
    %c0_15 = arith.constant 0 : index
    %c0_16 = arith.constant 0 : index
    %c0_17 = arith.constant 0 : index
    %c0_18 = arith.constant 0 : index
    %17 = vector.load %arg4[%c0_15, %c0_16, %c0_17, %c0_18] : memref<1x3x2x128xf32, #tpu.memory_space<vmem>>, vector<1x1x2x128xf32>
    %18 = vector.shape_cast %17 : vector<1x1x2x128xf32> to vector<2x128xf32>
    %19 = vector.shape_cast %16 : vector<2x128xf32> to vector<1x1x2x128xf32>
    tpu.vector_store %arg4[%c0_15, %c0_16, %c0_17, %c0_18], %19 {strides = array<i32>} : memref<1x3x2x128xf32, #tpu.memory_space<vmem>>, vector<1x1x2x128xf32>,
    %c1_19 = arith.constant 1 : index
    %c0_20 = arith.constant 0 : index
    %20 = memref.load %arg2[%c1_19, %c0_20] : memref<3x3xf32, #tpu.memory_space<smem>>
    %21 = vector.broadcast %20 : f32 to vector<2x128xf32>
    %22 = arith.mulf %1, %21 : vector<2x128xf32>
    %c1_21 = arith.constant 1 : index
    %c1_22 = arith.constant 1 : index
    %23 = memref.load %arg2[%c1_21, %c1_22] : memref<3x3xf32, #tpu.memory_space<smem>>
    %24 = vector.broadcast %23 : f32 to vector<2x128xf32>
    %25 = arith.mulf %3, %24 : vector<2x128xf32>
    %26 = arith.addf %22, %25 : vector<2x128xf32>
    %c1_23 = arith.constant 1 : index
    %c2_24 = arith.constant 2 : index
    %27 = memref.load %arg2[%c1_23, %c2_24] : memref<3x3xf32, #tpu.memory_space<smem>>
    %28 = vector.broadcast %27 : f32 to vector<2x128xf32>
    %29 = arith.mulf %5, %28 : vector<2x128xf32>
    %30 = arith.addf %26, %29 : vector<2x128xf32>
    %c0_25 = arith.constant 0 : index
    %c1_26 = arith.constant 1 : index
    %c0_27 = arith.constant 0 : index
    %c0_28 = arith.constant 0 : index
    %31 = vector.load %arg4[%c0_25, %c1_26, %c0_27, %c0_28] : memref<1x3x2x128xf32, #tpu.memory_space<vmem>>, vector<1x1x2x128xf32>
    %32 = vector.shape_cast %31 : vector<1x1x2x128xf32> to vector<2x128xf32>
    %33 = vector.shape_cast %30 : vector<2x128xf32> to vector<1x1x2x128xf32>
    tpu.vector_store %arg4[%c0_25, %c1_26, %c0_27, %c0_28], %33 {strides = array<i32>} : memref<1x3x2x128xf32, #tpu.memory_space<vmem>>, vector<1x1x2x128xf32>,
    %c2_29 = arith.constant 2 : index
    %c0_30 = arith.constant 0 : index
    %34 = memref.load %arg2[%c2_29, %c0_30] : memref<3x3xf32, #tpu.memory_space<smem>>
    %35 = vector.broadcast %34 : f32 to vector<2x128xf32>
    %36 = arith.mulf %1, %35 : vector<2x128xf32>
    %c2_31 = arith.constant 2 : index
    %c1_32 = arith.constant 1 : index
    %37 = memref.load %arg2[%c2_31, %c1_32] : memref<3x3xf32, #tpu.memory_space<smem>>
    %38 = vector.broadcast %37 : f32 to vector<2x128xf32>
    %39 = arith.mulf %3, %38 : vector<2x128xf32>
    %40 = arith.addf %36, %39 : vector<2x128xf32>
    %c2_33 = arith.constant 2 : index
    %c2_34 = arith.constant 2 : index
    %41 = memref.load %arg2[%c2_33, %c2_34] : memref<3x3xf32, #tpu.memory_space<smem>>
    %42 = vector.broadcast %41 : f32 to vector<2x128xf32>
    %43 = arith.mulf %5, %42 : vector<2x128xf32>
    %44 = arith.addf %40, %43 : vector<2x128xf32>
    %c0_35 = arith.constant 0 : index
    %c2_36 = arith.constant 2 : index
    %c0_37 = arith.constant 0 : index
    %c0_38 = arith.constant 0 : index
    %45 = vector.load %arg4[%c0_35, %c2_36, %c0_37, %c0_38] : memref<1x3x2x128xf32, #tpu.memory_space<vmem>>, vector<1x1x2x128xf32>
    %46 = vector.shape_cast %45 : vector<1x1x2x128xf32> to vector<2x128xf32>
    %47 = vector.shape_cast %44 : vector<2x128xf32> to vector<1x1x2x128xf32>
    tpu.vector_store %arg4[%c0_35, %c2_36, %c0_37, %c0_38], %47 {strides = array<i32>} : memref<1x3x2x128xf32, #tpu.memory_space<vmem>>, vector<1x1x2x128xf32>,
    return
  }
  func.func @transform_0(%arg0: i32, %arg1: i32) -> (i32, i32) {
    %c0_i32 = arith.constant 0 : i32
    %c0_i32_0 = arith.constant 0 : i32
    %c0_i32_1 = arith.constant 0 : i32
    return %c0_i32, %c0_i32_0 : i32, i32
  }
  func.func @transform_1(%arg0: i32, %arg1: i32) -> (i32, i32, i32, i32) {
    %c0_i32 = arith.constant 0 : i32
    %c0_i32_0 = arith.constant 0 : i32
    %c0_i32_1 = arith.constant 0 : i32
    return %arg0, %c0_i32, %arg1, %c0_i32_0 : i32, i32, i32, i32
  }
  func.func @transform_2(%arg0: i32, %arg1: i32) -> (i32, i32, i32, i32) {
    %c0_i32 = arith.constant 0 : i32
    %c0_i32_0 = arith.constant 0 : i32
    %c0_i32_1 = arith.constant 0 : i32
    return %arg0, %c0_i32, %arg1, %c0_i32_0 : i32, i32, i32, i32
  }
}

</mosaic_0001>

<bundles_post_ra>
// kernel: basic_model_forward.1
= control target key start
LH: loop header
LB: loop body
LE: loop exit
PB: predicated region body
PF: predicated region fallthrough
CT: control target
= control target key end

     0   :  { %7 = vsyncpa [#allocation3], 0  ;;  %s446_s9 = smov 0   ;;  %s448_s10 = smov 0   ;;  %s483_s0 = inlined_call_operand.vmem [shape: f32[3,3], index: 0, kind: input, shape index: {}]   ;;  %s484_s1 = inlined_call_operand.vmem [shape: f32[2,3,2,128], index: 1, kind: input, shape index: {}]   ;;  %s485_s2 = inlined_call_operand.vmem [shape: f32[2,3,2,128], index: 2, kind: output, shape index: {}]  }
   0x1   :  { %s450_s11 = smov 0  }
   0x2 LB: > { %s328_s12 = sadd.s32 4294967295, %s428_s11   ;;  %s25_s13 = sadd.s32 1, %s424_s10  ;;  %s428_s11 = sphi %s450_s11, %s13_s11   ;;  %s424_s10 = sphi %s448_s10, %s487_s10   ;;  %s420_s9 = sphi %s446_s9, %s486_s9  }
   0x3   : > { %p27_p0 = scmp.ge.s32.totalorder %s25_s13, 2  ;;  %p330_p1 = scmp.ge.s32.totalorder %s428_s11, 1 }
   0x4   : > { %p107_p2 = scmp.lt.s32.totalorder %s428_s11, 3  ;;  %p360_p4 = scmp.eq.s32.totalorder %s328_s12, 0 }
   0x5   : > { %s489_s13 = smov (%p27_p0, %s25_s13), 0  ;;  %s119_s16 = sshll.u32 %s483_s0, 4  ;;  %s120_s16 = int_to_ptr.vmem [resolvable:$true] %s119_s16 }
   0x6   : > { %p108_p3 = pnand %p330_p1, %p107_p2  ;;  %s430_s17 = smov [#allocation2]  }
   0x8   : > { %p356_p5 = pneg %p108_p3  ;;  %143 = sbr.rel (%p108_p3) target bundleno = 38 (0x26), region = 28 }
   0xa   : > { %p357_p6 = pnand %p360_p4, %p356_p5 }
   0xc   : > { %359 = dma.vmem_to_smem (!%p357_p6), %s120_s16, 64, %s430_s17, [#allocation3]  }
   0xd   : > { %415 = dma.done.wait (%p360_p4), [#allocation3], 64  }
   0xe   : > { %417 = vsyncadd (%p360_p4), [#allocation3], 4294967232 }
   0xf   : > { %150 = sfence }
  0x10   : > { %p173_p7 = scmp.lt.s32.totalorder %s420_s9, 1  ;;  %s194_s18 = sld [smem:[#allocation2]] }
  0x11   : > { %s339_s19 = sld [smem:[#allocation2 + $0x1]] }
  0x12   : > { %s491_s9 = smov (!%p173_p7, %s420_s9), 1  ;;  %s340_s20 = sld [smem:[#allocation2 + $0x2]] }
  0x13   : > { %s351_s21 = smul.u32 6, %s491_s9  ;;  %s341_s22 = sld [smem:[#allocation2 + $0x80]] }
  0x14   : > { %s342_s23 = sld [smem:[#allocation2 + $0x81]] }
  0x15   : > { %s180_s26 = scalar_lea.vmem %s484_s1, %s351_s21  ;;  %s343_s27 = sld [smem:[#allocation2 + $0x82]] }
  0x16   : > { %v195_v0 = vstv %s194_s18  ;;  %v189_v1 = vld [vmem:[%s180_s26] sm:$0x3]  ;;  %v337_v2 = vld [vmem:[%s180_s26 + $0x2] sm:$0x3]  ;;  %v338_v3 = vld [vmem:[%s180_s26 + $0x4] sm:$0x3]  ;;  %s188_s4 = scalar_lea.vmem %s485_s2, %s351_s21 }
  0x17   : > { %v198_v4 = vstv %s339_s19  ;;  %v196_v5 = vmul.f32 %v195_v0, %v189_v1  ;;  %s345_s28 = sld [smem:[#allocation2 + $0x100]] }
  0x18   : > { %v199_v6 = vmul.f32 %v337_v2, %v198_v4  ;;  %v202_v7 = vstv %s340_s20  ;;  %s346_s29 = sld [smem:[#allocation2 + $0x101]] }
  0x19   : > { %v203_v9 = vmul.f32 %v338_v3, %v202_v7  ;;  %v207_v10 = vstv %s341_s22  ;;  %s347_s5 = sld [smem:[#allocation2 + $0x102]] }
  0x1a   : > { %v200_v8 = vadd.f32 %v199_v6, %v196_v5  ;;  %v208_v11 = vmul.f32 %v207_v10, %v189_v1  ;;  %v210_v12 = vstv %s342_s23 }
  0x1b   : > { %v211_v14 = vmul.f32 %v337_v2, %v210_v12  ;;  %v214_v16 = vstv %s343_s27 }
  0x1c   : > { %v204_v13 = vadd.f32 %v203_v9, %v200_v8  ;;  %v215_v17 = vmul.f32 %v338_v3, %v214_v16 }
  0x1d   : > { %v212_v15 = vadd.f32 %v211_v14, %v208_v11  ;;  %v220_v18 = vstv %s345_s28 }
  0x1e   : > { %205 = vst [vmem:[%s188_s4] sm:$0x3] %v204_v13  ;;  %v221_v19 = vmul.f32 %v220_v18, %v189_v1  ;;  %v223_v20 = vstv %s346_s29 }
  0x1f   : > { %v216_v21 = vadd.f32 %v215_v17, %v212_v15  ;;  %v224_v22 = vmul.f32 %v337_v2, %v223_v20  ;;  %v227_v23 = vstv %s347_s5 }
  0x20   : > { %v228_v24 = vmul.f32 %v338_v3, %v227_v23 }
  0x21   : > { %344 = vst [vmem:[%s188_s4 + $0x2] sm:$0x3] %v216_v21  ;;  %v225_v25 = vadd.f32 %v224_v22, %v221_v19 }
  0x23   : > { %v229_v26 = vadd.f32 %v228_v24, %v225_v25 }
  0x25   : > { %348 = vst [vmem:[%s188_s4 + $0x4] sm:$0x3] %v229_v26 }
  0x26 PF: > { %s13_s11 = sadd.s32 1, %s428_s11   ;;  %s486_s9 = smov %s424_s10 }
  0x27   : > { %p10_p8 = scmp.ge.s32.totalorder %s13_s11, 4   ;;  %s487_s10 = smov %s489_s13 }
  0x29   :  { %12 = sbr.rel (!%p10_p8) target bundleno = 2 (0x2), region = 67 }
  0x2e   :  { %259 = vsyncpa [#allocation3], 1 }
  0x2f   :  { %261 = vsyncpa [#allocation3 + $0x1], 1 }

</bundles_post_ra>
